<compile_context>
chip_gen: v7x
topology: tpu7x:2x2x1
jax: 0.10.0
libtpu: 0.0.40
codegen_flags: <defaults>
</compile_context>

<pallas_src>
import numpy as np
import jax
import jax.numpy as jnp
from jax import lax
from jax.experimental import pallas as pl
from jax.experimental.pallas import tpu as pltpu

NEG_BIG = -1e30  # fill value for "no edge"

_UC = 8     # dst-row chunk (sublane granularity) inside the aggregation kernel
_DC = 128   # src-col chunk (lane granularity) inside the aggregation kernel


def _round_up(x, m):
    return ((x + m - 1) // m) * m


def _pick_tile(padded, preferred):
    """Largest preferred tile that divides `padded` (padded is a multiple of 128)."""
    for t in preferred:
        if t <= padded and padded % t == 0:
            return t
    return 128


# ----------------------------------------------------------------------------
# Kernel 1: pairwise squared distances (directional KNN metric, down -> up)
# dist[i, j] = sum_c (down[i, c] - up[c, j])^2   -- pure VPU, tiled over both
# axes; output blocks are lane-dense (up axis padded to a multiple of 128).
# ----------------------------------------------------------------------------
def _pairwise_dist_kernel(down_ref, upT_ref, dist_ref):
    dn = down_ref[...]                                   # [tile_dn, 3]
    up = upT_ref[...]                                    # [3, tile_up]
    d0 = dn[:, 0:1] - up[0:1, :]
    d1 = dn[:, 1:2] - up[1:2, :]
    d2 = dn[:, 2:3] - up[2:3, :]
    dist_ref[...] = d0 * d0 + d1 * d1 + d2 * d2          # [tile_dn, tile_up]


def pairwise_dist_sq(down_pad, upT_pad, tile_dn, tile_up):
    n_down_pad = down_pad.shape[0]
    n_up_pad = upT_pad.shape[1]
    return pl.pallas_call(
        _pairwise_dist_kernel,
        out_shape=jax.ShapeDtypeStruct((n_down_pad, n_up_pad), jnp.float32),
        grid_spec=pltpu.PrefetchScalarGridSpec(
            num_scalar_prefetch=0,
            grid=(n_down_pad // tile_dn, n_up_pad // tile_up),
            in_specs=[pl.BlockSpec((tile_dn, 3), lambda i, j: (i, 0)),
                      pl.BlockSpec((3, tile_up), lambda i, j: (0, j))],
            out_specs=pl.BlockSpec((tile_dn, tile_up), lambda i, j: (i, j)),
        ),
        compiler_params=pltpu.CompilerParams(
            dimension_semantics=("parallel", "parallel")),
    )(down_pad, upT_pad)


# ----------------------------------------------------------------------------
# Kernel 2: src (down) node embedding, computed ONCE (hoisted out of the
# aggregation grid).  Bias is folded into the matmul (ones row in xT_aug,
# bias column in W_aug).  Output is transposed: src nodes on the lane axis.
# ----------------------------------------------------------------------------
def _embed_kernel(w_ref, xT_ref, featT_ref):
    featT_ref[...] = jnp.dot(w_ref[...], xT_ref[...],
                             preferred_element_type=jnp.float32)


def embed_src_nodes(W_aug, xT_aug, tile_d):
    H, Kp = W_aug.shape
    n_down_pad = xT_aug.shape[1]
    return pl.pallas_call(
        _embed_kernel,
        out_shape=jax.ShapeDtypeStruct((H, n_down_pad), jnp.float32),
        grid_spec=pltpu.PrefetchScalarGridSpec(
            num_scalar_prefetch=0,
            grid=(n_down_pad // tile_d,),
            in_specs=[pl.BlockSpec((H, Kp), lambda d: (0, 0)),        # resident
                      pl.BlockSpec((Kp, tile_d), lambda d: (0, d))],
            out_specs=pl.BlockSpec((H, tile_d), lambda d: (0, d)),
        ),
        compiler_params=pltpu.CompilerParams(
            dimension_semantics=("parallel",)),
    )(W_aug, xT_aug)


# ----------------------------------------------------------------------------
# Kernel 3: DGL-style max aggregation of pre-computed src features onto dst
# (up) nodes.  Grid = (dst_tiles, src_tiles); src axis last ("arbitrary").
# The output block index is constant over the src axis, so the output block is
# resident and used directly as the running-max accumulator.  The masked-max
# is chunked (8 dst rows x 128 src lanes) so nothing spills to VMEM.
# ----------------------------------------------------------------------------
def _maxagg_kernel(featT_ref, mask_ref, out_ref):
    d_step = pl.program_id(1)
    H, tile_d = featT_ref.shape
    tile_u = mask_ref.shape[0]

    @pl.when(d_step == 0)
    def _init():
        out_ref[...] = jnp.full(out_ref.shape, NEG_BIG, out_ref.dtype)

    # Chunked masked max: live working set per chunk is [H, 8, 128] (~32 vregs)
    for u0 in range(0, tile_u, _UC):
        cmax = jnp.full((H, _UC), NEG_BIG, jnp.float32)
        for d0 in range(0, tile_d, _DC):
            msk = mask_ref[u0:u0 + _UC, d0:d0 + _DC] != 0             # [UC, DC]
            f = featT_ref[:, d0:d0 + _DC]                             # [H, DC]
            masked = jnp.where(msk[None, :, :], f[:, None, :], NEG_BIG)
            cmax = jnp.maximum(cmax, jnp.max(masked, axis=-1))        # [H, UC]
        out_ref[:, u0:u0 + _UC] = jnp.maximum(out_ref[:, u0:u0 + _UC], cmax)

    @pl.when(d_step == pl.num_programs(1) - 1)
    def _finalize():
        acc = out_ref[...]
        # zero-in-degree dsts never received a message -> zeros (DGL update_all)
        out_ref[...] = jnp.where(acc > 0.5 * NEG_BIG, acc, 0.0)


def max_aggregate(featT, mask, tile_u, tile_d):
    H, n_down_pad = featT.shape
    n_up_pad = mask.shape[0]
    return pl.pallas_call(
        _maxagg_kernel,
        out_shape=jax.ShapeDtypeStruct((H, n_up_pad), jnp.float32),
        grid_spec=pltpu.PrefetchScalarGridSpec(
            num_scalar_prefetch=0,
            grid=(n_up_pad // tile_u, n_down_pad // tile_d),
            in_specs=[
                pl.BlockSpec((H, tile_d), lambda u, d: (0, d)),       # featT (src tile)
                pl.BlockSpec((tile_u, tile_d), lambda u, d: (u, d)),  # int8 adjacency
            ],
            out_specs=pl.BlockSpec((H, tile_u), lambda u, d: (0, u)),  # lane-dense
        ),
        compiler_params=pltpu.CompilerParams(
            dimension_semantics=("parallel", "arbitrary")),
    )(featT, mask)


# ----------------------------------------------------------------------------
# Forward pass (single graph in the batch).
# ----------------------------------------------------------------------------
def downsample_maxpull_forward(h, s_l, scores, particle_number, W, b):
    N, H = h.shape
    n_up = int(np.floor(N * 0.25))
    n_down = N - n_up
    m = 5 if n_up > 5 else n_up                       # M_i = min(5, number_up)

    # --- up-point selection: top 25% by score (glue: sorting/top-k) ---
    up_top_idx = lax.top_k(scores, n_up)[1]
    up_mask = jnp.zeros((N,), jnp.bool_).at[up_top_idx].set(True)
    up_idx = jnp.nonzero(up_mask, size=n_up)[0]       # ascending node-id order
    down_idx = jnp.nonzero(~up_mask, size=n_down)[0]

    # padded extents (128-aligned so blocks are (8,128)-legal and lane-dense)
    n_up_pad = _round_up(n_up, 128)
    n_down_pad = _round_up(n_down, 128)
    tile_u = _pick_tile(n_up_pad, (512, 256, 128))
    tile_d = _pick_tile(n_down_pad, (256, 128))
    tile_dn = _pick_tile(n_down_pad, (1024, 512, 256, 128))
    tile_up = _pick_tile(n_up_pad, (512, 256, 128))

    # --- directional KNN down -> up: distances in Pallas, selection in glue ---
    # TODO(synk): fuse the m=5 selection (running per-row top-5 over up tiles)
    # into the distance kernel so only [n_down, 5] ever hits HBM.
    down_coords = s_l[down_idx]                       # [n_down, 3]
    up_coords = s_l[up_idx]                           # [n_up, 3]
    down_pad = jnp.zeros((n_down_pad, 3), jnp.float32).at[:n_down].set(down_coords)
    upT_pad = jnp.zeros((3, n_up_pad), jnp.float32).at[:, :n_up].set(up_coords.T)
    dist_sq = pairwise_dist_sq(down_pad, upT_pad, tile_dn, tile_up)[:n_down, :n_up]
    neigh_idx = lax.top_k(-dist_sq, m)[1]             # [n_down, m] into up list
    j = up_idx[neigh_idx].reshape(-1)                 # edge dst (up nodes, global ids)
    i = jnp.repeat(down_idx, m)                       # edge src (down nodes, global ids)

    # int8 adjacency restricted to (up dst x down src); consumed tile-by-tile.
    # TODO(synk): for large graphs replace this dense scatter + dense mask DMA
    # with scalar-prefetched CSR edge lists (PrefetchScalarGridSpec).
    mask = jnp.zeros((n_up_pad, n_down_pad), jnp.int8).at[
        neigh_idx.reshape(-1), jnp.repeat(jnp.arange(n_down), m)].set(1)

    # --- embedding input cat(h, s_l, scores), src (down) nodes only,
    #     transposed (src on lanes); bias folded into the matmul. ---
    x_down = jnp.concatenate(
        [h[down_idx], down_coords, scores[down_idx][:, None]], axis=1)   # [n_down, H+4]
    K = H + 4
    Kp = _round_up(K + 1, 8)
    xT_aug = jnp.zeros((Kp, n_down_pad), jnp.float32)
    xT_aug = xT_aug.at[:K, :n_down].set(x_down.T).at[K, :].set(1.0)
    W_aug = jnp.zeros((H, Kp), jnp.float32).at[:, :K].set(W).at[:, K].set(b)

    featT = embed_src_nodes(W_aug, xT_aug,
                            _pick_tile(n_down_pad, (512, 256, 128)))     # [H, n_down_pad]
    outT = max_aggregate(featT, mask, tile_u, tile_d)                    # [H, n_up_pad]
    agg_up = outT.T[:n_up]                            # [n_up, H]
    features = jnp.zeros((N, H), h.dtype).at[up_idx].set(agg_up)

    # graphs_U payload (up-node-only "graph")
    graphs_U = {
        "particle_number": particle_number[up_idx],
        "s_l": s_l[up_idx],
    }
    return features, up_mask, graphs_U, i, j


if __name__ == "__main__":
    key = jax.random.PRNGKey(0)
    N, H = 64, 32                                     # nodes, hidden_dim
    k1, k2, k3, k4, k5, k6 = jax.random.split(key, 6)
    h = jax.random.normal(k1, (N, H), jnp.float32)
    s_l = jax.random.normal(k2, (N, 3), jnp.float32)
    scores = jax.random.uniform(k3, (N,), jnp.float32)
    particle_number = jax.random.randint(k4, (N,), 0, 10).astype(jnp.float32)

    # Linear(hidden_dim + 4, hidden_dim), PyTorch-style uniform init
    fan_in = H + 4
    bound = 1.0 / np.sqrt(fan_in)
    W = jax.random.uniform(k5, (H, fan_in), jnp.float32, -bound, bound)   # [out, in]
    b = jax.random.uniform(k6, (H,), jnp.float32, -bound, bound)

    features, up_points, graphs_U, ei, ej = downsample_maxpull_forward(
        h, s_l, scores, particle_number, W, b)
    jax.block_until_ready((features, up_points, ei, ej))

    # ---- pure-JAX reference of the hot path ----
    n_up = int(np.floor(N * 0.25)); n_down = N - n_up; m = min(5, n_up)
    up_top_idx = lax.top_k(scores, n_up)[1]
    up_mask = jnp.zeros((N,), jnp.bool_).at[up_top_idx].set(True)
    up_idx = jnp.nonzero(up_mask, size=n_up)[0]
    down_idx = jnp.nonzero(~up_mask, size=n_down)[0]
    d = s_l[down_idx]; u = s_l[up_idx]
    dref = ((d[:, None, :] - u[None, :, :]) ** 2).sum(-1)
    nref = lax.top_k(-dref, m)[1]                                   # [n_down, m]
    feat_full = jnp.concatenate([h, s_l, scores[:, None]], axis=1) @ W.T + b
    msgs = feat_full[down_idx]                                      # [n_down, H]
    onehot = (nref[:, :, None] == jnp.arange(n_up)[None, None, :]).any(axis=1)
    cube = jnp.where(onehot[:, :, None], msgs[:, None, :], -jnp.inf)
    agg = cube.max(axis=0)                                          # [n_up, H]
    agg = jnp.where(onehot.any(axis=0)[:, None], agg, 0.0)
    ref_out = jnp.zeros((N, H), jnp.float32).at[up_idx].set(agg)

    np.testing.assert_allclose(np.asarray(features), np.asarray(ref_out),
                               rtol=1e-2, atol=1e-2)
    assert features.shape == (N, H) and up_points.shape == (N,)
    assert ei.shape == (n_down * m,) and ej.shape == (n_down * m,)
    print("KERNEL_OK")
</pallas_src>

<mosaic_0001>
module attributes {stable_mosaic.version = 11 : i64} {
  func.func @_pairwise_dist_kernel(%arg0: i32, %arg1: i32, %arg2: memref<128x3xf32, #tpu.memory_space<vmem>>, %arg3: memref<3x128xf32, #tpu.memory_space<vmem>>, %arg4: memref<128x128xf32, #tpu.memory_space<vmem>>) attributes {dimension_semantics = [#tpu.dimension_semantics<parallel>, #tpu.dimension_semantics<parallel>], iteration_bounds = array<i64: 1, 1>, scalar_prefetch = 0 : i64, scratch_operands = 0 : i64, tpu.core_type = #tpu.core_type<tc>, window_params = [{transform_indices = @transform_0, window_bounds = array<i64: 128, 3>}, {transform_indices = @transform_1, window_bounds = array<i64: 3, 128>}, {transform_indices = @transform_2, window_bounds = array<i64: 128, 128>}]} {
    %c0 = arith.constant 0 : index
    %c0_0 = arith.constant 0 : index
    %0 = vector.load %arg2[%c0, %c0_0] : memref<128x3xf32, #tpu.memory_space<vmem>>, vector<128x3xf32>
    %c0_1 = arith.constant 0 : index
    %c0_2 = arith.constant 0 : index
    %1 = vector.load %arg3[%c0_1, %c0_2] : memref<3x128xf32, #tpu.memory_space<vmem>>, vector<3x128xf32>
    %2 = vector.extract_strided_slice %0 {offsets = [0, 0], sizes = [128, 1], strides = [1, 1]} : vector<128x3xf32> to vector<128x1xf32>
    %3 = vector.extract_strided_slice %1 {offsets = [0, 0], sizes = [1, 128], strides = [1, 1]} : vector<3x128xf32> to vector<1x128xf32>
    %4 = vector.broadcast %2 : vector<128x1xf32> to vector<128x128xf32>
    %5 = vector.broadcast %3 : vector<1x128xf32> to vector<128x128xf32>
    %6 = arith.subf %4, %5 : vector<128x128xf32>
    %7 = vector.extract_strided_slice %0 {offsets = [0, 1], sizes = [128, 1], strides = [1, 1]} : vector<128x3xf32> to vector<128x1xf32>
    %8 = vector.extract_strided_slice %1 {offsets = [1, 0], sizes = [1, 128], strides = [1, 1]} : vector<3x128xf32> to vector<1x128xf32>
    %9 = vector.broadcast %7 : vector<128x1xf32> to vector<128x128xf32>
    %10 = vector.broadcast %8 : vector<1x128xf32> to vector<128x128xf32>
    %11 = arith.subf %9, %10 : vector<128x128xf32>
    %12 = vector.extract_strided_slice %0 {offsets = [0, 2], sizes = [128, 1], strides = [1, 1]} : vector<128x3xf32> to vector<128x1xf32>
    %13 = vector.extract_strided_slice %1 {offsets = [2, 0], sizes = [1, 128], strides = [1, 1]} : vector<3x128xf32> to vector<1x128xf32>
    %14 = vector.broadcast %12 : vector<128x1xf32> to vector<128x128xf32>
    %15 = vector.broadcast %13 : vector<1x128xf32> to vector<128x128xf32>
    %16 = arith.subf %14, %15 : vector<128x128xf32>
    %17 = arith.mulf %6, %6 : vector<128x128xf32>
    %18 = arith.mulf %11, %11 : vector<128x128xf32>
    %19 = arith.addf %17, %18 : vector<128x128xf32>
    %20 = arith.mulf %16, %16 : vector<128x128xf32>
    %21 = arith.addf %19, %20 : vector<128x128xf32>
    %c0_3 = arith.constant 0 : index
    %c0_4 = arith.constant 0 : index
    %22 = vector.load %arg4[%c0_3, %c0_4] : memref<128x128xf32, #tpu.memory_space<vmem>>, vector<128x128xf32>
    tpu.vector_store %arg4[%c0_3, %c0_4], %21 {strides = array<i32>} : memref<128x128xf32, #tpu.memory_space<vmem>>, vector<128x128xf32>,
    return
  }
  func.func @transform_0(%arg0: i32, %arg1: i32) -> (i32, i32) {
    %c0_i32 = arith.constant 0 : i32
    %c0_i32_0 = arith.constant 0 : i32
    return %arg0, %c0_i32 : i32, i32
  }
  func.func @transform_1(%arg0: i32, %arg1: i32) -> (i32, i32) {
    %c0_i32 = arith.constant 0 : i32
    %c0_i32_0 = arith.constant 0 : i32
    return %c0_i32, %arg1 : i32, i32
  }
  func.func @transform_2(%arg0: i32, %arg1: i32) -> (i32, i32) {
    %c0_i32 = arith.constant 0 : i32
    return %arg0, %arg1 : i32, i32
  }
}

</mosaic_0001>

<bundles_post_ra>
// kernel: tpu_custom_call.1
= control target key start
LH: loop header
LB: loop body
LE: loop exit
PB: predicated region body
PF: predicated region fallthrough
CT: control target
= control target key end

     0   :  { %v445_v2 = vmov 0   ;;  %s640_s0 = inlined_call_operand.vmem [shape: f32[128,3], index: 0, kind: input, shape index: {}]   ;;  %s641_s1 = inlined_call_operand.vmem [shape: f32[3,128], index: 1, kind: input, shape index: {}]   ;;  %s642_s2 = inlined_call_operand.hbm [shape: f32[128,128], index: 2, kind: output, shape index: {}]  }
   0x1   :  { %v14_v0 = vld [vmem:[%s640_s0 + $0x10] sm:$0xff]  ;;  %v12_v1 = vld [vmem:[%s640_s0] sm:$0xff]  ;;  %416 = vset.pattern.permute.xlu1 %v445_v2  ;;  %415 = vset.pattern.permute.xlu0 %v445_v2  ;;  %v15_v3 = vld [vmem:[%s640_s0 + $0x18] sm:$0xff] }
   0x2   :  { %41 = vperm.xlu1 %416, %v14_v0   ;;  %31 = vperm.xlu0 %415, %v12_v1   ;;  %v13_v4 = vld [vmem:[%s640_s0 + $0x8] sm:$0xff] }
   0x3   :  { %7 = vsyncpa [#allocation3], 0  ;;  %v17_v5 = vld [vmem:[%s640_s0 + $0x28] sm:$0xff]  ;;  %v16_v6 = vld [vmem:[%s640_s0 + $0x20] sm:$0xff]  ;;  %v446_v17 = vmov 1   ;;  %v447_v18 = vmov 2   ;;  %v109_v43 = vlaneseq }
   0x4   :  { %v19_v7 = vld [vmem:[%s640_s0 + $0x38] sm:$0xff]  ;;  %v18_v8 = vld [vmem:[%s640_s0 + $0x30] sm:$0xff]  ;;  %v21_v9 = vld [vmem:[%s640_s0 + $0x48] sm:$0xff] }
   0x5   :  { %v20_v10 = vld [vmem:[%s640_s0 + $0x40] sm:$0xff]  ;;  %v23_v11 = vld [vmem:[%s640_s0 + $0x58] sm:$0xff]  ;;  %v22_v12 = vld [vmem:[%s640_s0 + $0x50] sm:$0xff]  ;;  %v110_v46 = vshrl.u32 %v109_v43, 7 }
   0x6   :  { %46 = vperm.xlu1 %416, %v15_v3   ;;  %36 = vperm.xlu0 %415, %v13_v4   ;;  %v25_v13 = vld [vmem:[%s640_s0 + $0x68] sm:$0xff]  ;;  %v24_v14 = vld [vmem:[%s640_s0 + $0x60] sm:$0xff]  ;;  %v27_v15 = vld [vmem:[%s640_s0 + $0x78] sm:$0xff] }
   0x7   :  { %v26_v16 = vld [vmem:[%s640_s0 + $0x70] sm:$0xff]  ;;  %v195_v47 = vsub.s32 1, %v110_v46  ;;  %v28_v50 = vld [vmem:[%s641_s1] sm:$0x7]  ;;  %v111_v51 = vsub.s32 0, %v110_v46  ;;  %v279_v55 = vsub.s32 2, %v110_v46 }
   0x8   :  { %s448_s1 = smov [#allocation2]  }
   0x9   :  { %v547_v52 = vrot.slane %v28_v50, %v195_v47  ;;  %v553_v56 = vrot.slane %v28_v50, %v111_v51  ;;  %v563_v63 = vrot.slane %v28_v50, %v279_v55  ;;  %s398_s14 = sshll.u32 %s448_s1, 4  ;;  %s399_s14 = int_to_ptr.vmem [resolvable:$true] %s398_s14 }
   0xa   :  { %56 = vperm.xlu1 %416, %v17_v5   ;;  %51 = vperm.xlu0 %415, %v16_v6   ;;  %s421_s15 = scalar_lea.vmem %s399_s14, 2048  ;;  %p426_p1 = scmp.lt.s32.totalorder %s399_s14, %s399_s14 }
   0xb   :  { %p422_p0 = scmp.ne.s32.totalorder %s399_s14, %s421_s15  ;;  %p427_p2 = scmp.lt.s32.totalorder %s421_s15, %s421_s15 }
   0xd   :  { %p428_p3 = por %p427_p2, %p426_p1 }
   0xe   :  { %66 = vperm.xlu1 %416, %v19_v7   ;;  %61 = vperm.xlu0 %415, %v18_v8  }
   0xf   :  { %p429_p4 = pnand %p428_p3, %p422_p0 }
  0x12   :  { %76 = vperm.xlu1 %416, %v21_v9   ;;  %71 = vperm.xlu0 %415, %v20_v10  }
  0x16   :  { %86 = vperm.xlu1 %416, %v23_v11   ;;  %81 = vperm.xlu0 %415, %v22_v12  }
  0x1a   :  { %96 = vperm.xlu1 %416, %v25_v13   ;;  %91 = vperm.xlu0 %415, %v24_v14  }
  0x1e   :  { %106 = vperm.xlu1 %416, %v27_v15   ;;  %101 = vperm.xlu0 %415, %v26_v16  }
  0x22   :  { %418 = vset.pattern.permute.xlu1 %v446_v17  ;;  %417 = vset.pattern.permute.xlu0 %v446_v17 }
  0x23   :  { %134 = vperm.xlu1 %418, %v13_v4   ;;  %130 = vperm.xlu0 %417, %v12_v1  }
  0x27   :  { %138 = vperm.xlu1 %418, %v14_v0   ;;  %142 = vperm.xlu0 %417, %v15_v3  }
  0x2b   :  { %146 = vperm.xlu1 %418, %v16_v6   ;;  %150 = vperm.xlu0 %417, %v17_v5  }
  0x2f   :  { %154 = vperm.xlu1 %418, %v18_v8   ;;  %158 = vperm.xlu0 %417, %v19_v7  }
  0x33   :  { %162 = vperm.xlu1 %418, %v20_v10   ;;  %166 = vperm.xlu0 %417, %v21_v9  }
  0x37   :  { %170 = vperm.xlu1 %418, %v22_v12   ;;  %174 = vperm.xlu0 %417, %v23_v11  }
  0x3b   :  { %178 = vperm.xlu1 %418, %v24_v14   ;;  %182 = vperm.xlu0 %417, %v25_v13  }
  0x3f   :  { %186 = vperm.xlu1 %418, %v26_v16   ;;  %190 = vperm.xlu0 %417, %v27_v15  }
  0x43   :  { %419 = vset.pattern.permute.xlu1 %v447_v18  ;;  %420 = vset.pattern.permute.xlu0 %v447_v18 }
  0x44   :  { %214 = vperm.xlu1 %419, %v12_v1   ;;  %218 = vperm.xlu0 %420, %v13_v4  }
  0x48   :  { %222 = vperm.xlu1 %419, %v14_v0   ;;  %230 = vperm.xlu0 %420, %v16_v6  }
  0x4c   :  { %226 = vperm.xlu1 %419, %v15_v3   ;;  %238 = vperm.xlu0 %420, %v18_v8  }
  0x50   :  { %234 = vperm.xlu1 %419, %v17_v5   ;;  %246 = vperm.xlu0 %420, %v20_v10  }
  0x54   :  { %242 = vperm.xlu1 %419, %v19_v7   ;;  %254 = vperm.xlu0 %420, %v22_v12  }
  0x58   :  { %250 = vperm.xlu1 %419, %v21_v9   ;;  %262 = vperm.xlu0 %420, %v24_v14  }
  0x5c   :  { %258 = vperm.xlu1 %419, %v23_v11   ;;  %270 = vperm.xlu0 %420, %v26_v16  }
  0x60   :  { %266 = vperm.xlu1 %419, %v25_v13  }
  0x64   :  { %274 = vperm.xlu1 %419, %v27_v15  }
  0x81   :  { %v42_v19 = vpop.permute.xlu1 %41  ;;  %v32_v20 = vpop.permute.xlu0 %31 }
  0x82   :  { %v113_v62 = vsub.f32 %v32_v20, %v553_v56  ;;  %v115_v4 = vsub.f32 %v42_v19, %v553_v56 }
  0x84   :  { %v297_v9 = vmul.f32 %v113_v62, %v113_v62  ;;  %v299_v20 = vmul.f32 %v115_v4, %v115_v4 }
  0x85   :  { %v514_v21 = vpop.permute.xlu1 %46  ;;  %v37_v22 = vpop.permute.xlu0 %36 }
  0x86   :  { %v114_v61 = vsub.f32 %v37_v22, %v553_v56  ;;  %v116_v22 = vsub.f32 %v514_v21, %v553_v56 }
  0x88   :  { %v298_v5 = vmul.f32 %v114_v61, %v114_v61 }
  0x89   :  { %v516_v23 = vpop.permute.xlu1 %56  ;;  %v52_v24 = vpop.permute.xlu0 %51 }
  0x8a   :  { %v117_v6 = vsub.f32 %v52_v24, %v553_v56  ;;  %v118_v61 = vsub.f32 %v516_v23, %v553_v56 }
  0x8c   :  { %v301_v24 = vmul.f32 %v117_v6, %v117_v6 }
  0x8d   :  { %v518_v25 = vpop.permute.xlu1 %66  ;;  %v62_v26 = vpop.permute.xlu0 %61 }
  0x91   :  { %v520_v27 = vpop.permute.xlu1 %76  ;;  %v522_v28 = vpop.permute.xlu0 %71 }
  0x95   :  { %v524_v29 = vpop.permute.xlu1 %86  ;;  %v526_v30 = vpop.permute.xlu0 %81 }
  0x99   :  { %v528_v31 = vpop.permute.xlu1 %96  ;;  %v530_v32 = vpop.permute.xlu0 %91 }
  0x9d   :  { %v532_v33 = vpop.permute.xlu1 %106  ;;  %v534_v34 = vpop.permute.xlu0 %101 }
  0xa2   :  { %v135_v35 = vpop.permute.xlu1 %134  ;;  %v131_v36 = vpop.permute.xlu0 %130 }
  0xa3   :  { %v198_v57 = vsub.f32 %v135_v35, %v547_v52  ;;  %v197_v58 = vsub.f32 %v131_v36, %v547_v52  ;;  %v119_v35 = vsub.f32 %v62_v26, %v553_v56 }
  0xa5   :  { %v314_v0 = vmul.f32 %v198_v57, %v198_v57  ;;  %v313_v3 = vmul.f32 %v197_v58, %v197_v58  ;;  %v300_v58 = vmul.f32 %v116_v22, %v116_v22  ;;  %v303_v62 = vmul.f32 %v119_v35, %v119_v35 }
  0xa6   :  { %v139_v37 = vpop.permute.xlu1 %138  ;;  %v143_v38 = vpop.permute.xlu0 %142 }
  0xa7   :  { %v199_v1 = vsub.f32 %v139_v37, %v547_v52  ;;  %v330_v12 = vadd.f32 %v314_v0, %v298_v5  ;;  %v200_v14 = vsub.f32 %v143_v38, %v547_v52  ;;  %v329_v16 = vadd.f32 %v313_v3, %v297_v9 }
  0xa8   :  { %v121_v0 = vsub.f32 %v522_v28, %v553_v56 }
  0xa9   :  { %v315_v13 = vmul.f32 %v199_v1, %v199_v1  ;;  %v316_v50 = vmul.f32 %v200_v14, %v200_v14  ;;  %v123_v14 = vsub.f32 %v526_v30, %v553_v56 }
  0xaa   :  { %v147_v39 = vpop.permute.xlu1 %146  ;;  %v151_v40 = vpop.permute.xlu0 %150 }
  0xab   :  { %v201_v2 = vsub.f32 %v147_v39, %v547_v52  ;;  %v331_v47 = vadd.f32 %v315_v13, %v299_v20  ;;  %v202_v51 = vsub.f32 %v151_v40, %v547_v52  ;;  %v332_v5 = vadd.f32 %v316_v50, %v300_v58 }
  0xac   :  { %v305_v13 = vmul.f32 %v121_v0, %v121_v0 }
  0xad   :  { %v317_v15 = vmul.f32 %v201_v2, %v201_v2  ;;  %v318_v6 = vmul.f32 %v202_v51, %v202_v51 }
  0xae   :  { %v155_v41 = vpop.permute.xlu1 %154  ;;  %v536_v42 = vpop.permute.xlu0 %158 }
  0xaf   :  { %v203_v17 = vsub.f32 %v155_v41, %v547_v52  ;;  %v333_v41 = vadd.f32 %v317_v15, %v301_v24 }
  0xb1   :  { %v319_v55 = vmul.f32 %v203_v17, %v203_v17 }
  0xb2   :  { %v163_v44 = vpop.permute.xlu1 %162  ;;  %v538_v45 = vpop.permute.xlu0 %166 }
  0xb3   :  { %v205_v57 = vsub.f32 %v163_v44, %v547_v52  ;;  %v206_v22 = vsub.f32 %v538_v45, %v547_v52 }
  0xb5   :  { %v321_v9 = vmul.f32 %v205_v57, %v205_v57 }
  0xb6   :  { %v540_v48 = vpop.permute.xlu1 %170  ;;  %v542_v49 = vpop.permute.xlu0 %174 }
  0xb7   :  { %v207_v23 = vsub.f32 %v540_v48, %v547_v52  ;;  %v337_v35 = vadd.f32 %v321_v9, %v305_v13  ;;  %v126_v9 = vsub.f32 %v528_v31, %v553_v56 }
  0xb9   :  { %v323_v24 = vmul.f32 %v207_v23, %v207_v23  ;;  %v310_v31 = vmul.f32 %v126_v9, %v126_v9 }
  0xba   :  { %v549_v53 = vpop.permute.xlu1 %178  ;;  %v551_v54 = vpop.permute.xlu0 %182 }
  0xbe   :  { %v557_v59 = vpop.permute.xlu1 %186  ;;  %v559_v60 = vpop.permute.xlu0 %190 }
  0xc3   :  { %v215_v7 = vpop.permute.xlu1 %214  ;;  %v219_v8 = vpop.permute.xlu0 %218 }
  0xc4   :  { %v281_v10 = vsub.f32 %v215_v7, %v563_v63  ;;  %v282_v11 = vsub.f32 %v219_v8, %v563_v63  ;;  %v204_v7 = vsub.f32 %v536_v42, %v547_v52  ;;  %v335_v8 = vadd.f32 %v319_v55, %v303_v62 }
  0xc5   :  { %v322_v55 = vmul.f32 %v206_v22, %v206_v22  ;;  %v124_v62 = vsub.f32 %v524_v29, %v553_v56 }
  0xc6   :  { %v345_v18 = vmul.f32 %v281_v10, %v281_v10  ;;  %v346_v19 = vmul.f32 %v282_v11, %v282_v11  ;;  %v302_v11 = vmul.f32 %v118_v61, %v118_v61  ;;  %v320_v20 = vmul.f32 %v204_v7, %v204_v7 }
  0xc7   :  { %v223_v36 = vpop.permute.xlu1 %222  ;;  %v231_v37 = vpop.permute.xlu0 %230 }
  0xc8   :  { %v361_v39 = vadd.f32 %v345_v18, %v329_v16  ;;  %v362_v43 = vadd.f32 %v346_v19, %v330_v12  ;;  %v283_v46 = vsub.f32 %v223_v36, %v563_v63  ;;  %v285_v38 = vsub.f32 %v231_v37, %v563_v63 }
  0xc9   :  { %v120_v12 = vsub.f32 %v518_v25, %v553_v56  ;;  %v334_v19 = vadd.f32 %v318_v6, %v302_v11  ;;  %v209_v25 = vsub.f32 %v549_v53, %v547_v52  ;;  %v210_v6 = vsub.f32 %v551_v54, %v547_v52 }
  0xca   :  { %377 = vst [vmem:[#allocation2] sm:$0xff] %v361_v39  ;;  %378 = vst [vmem:[#allocation2 + $0x8] sm:$0xff] %v362_v43  ;;  %v347_v21 = vmul.f32 %v283_v46, %v283_v46  ;;  %v349_v26 = vmul.f32 %v285_v38, %v285_v38  ;;  %v122_v39 = vsub.f32 %v520_v27, %v553_v56 }
  0xcb   :  { %v227_v1 = vpop.permute.xlu1 %226  ;;  %v239_v2 = vpop.permute.xlu0 %238  ;;  %v304_v37 = vmul.f32 %v120_v12, %v120_v12  ;;  %v307_v43 = vmul.f32 %v123_v14, %v123_v14  ;;  %v125_v46 = vsub.f32 %v530_v32, %v553_v56  ;;  %v211_v27 = vsub.f32 %v557_v59, %v547_v52 }
  0xcc   :  { %v363_v3 = vadd.f32 %v347_v21, %v331_v47  ;;  %v365_v4 = vadd.f32 %v349_v26, %v333_v41  ;;  %v284_v40 = vsub.f32 %v227_v1, %v563_v63  ;;  %v287_v44 = vsub.f32 %v239_v2, %v563_v63 }
  0xcd   :  { %v336_v51 = vadd.f32 %v320_v20, %v304_v37  ;;  %v339_v57 = vadd.f32 %v323_v24, %v307_v43  ;;  %v208_v21 = vsub.f32 %v542_v49, %v547_v52  ;;  %v325_v26 = vmul.f32 %v209_v25, %v209_v25 }
  0xce   :  { %379 = vst [vmem:[#allocation2 + $0x10] sm:$0xff] %v363_v3  ;;  %381 = vst [vmem:[#allocation2 + $0x20] sm:$0xff] %v365_v4  ;;  %v348_v28 = vmul.f32 %v284_v40, %v284_v40  ;;  %v351_v10 = vmul.f32 %v287_v44, %v287_v44  ;;  %v306_v61 = vmul.f32 %v122_v39, %v122_v39 }
  0xcf   :  { %v235_v15 = vpop.permute.xlu1 %234  ;;  %v247_v16 = vpop.permute.xlu0 %246  ;;  %v309_v0 = vmul.f32 %v125_v46, %v125_v46  ;;  %v127_v1 = vsub.f32 %v534_v34, %v553_v56  ;;  %v327_v23 = vmul.f32 %v211_v27, %v211_v27  ;;  %v308_v34 = vmul.f32 %v124_v62, %v124_v62 }
  0xd0   :  { %v364_v42 = vadd.f32 %v348_v28, %v332_v5  ;;  %v367_v17 = vadd.f32 %v351_v10, %v335_v8  ;;  %v286_v48 = vsub.f32 %v235_v15, %v563_v63  ;;  %v289_v18 = vsub.f32 %v247_v16, %v563_v63 }
  0xd1   :  { %v338_v44 = vadd.f32 %v322_v55, %v306_v61  ;;  %v324_v5 = vmul.f32 %v208_v21, %v208_v21  ;;  %v341_v7 = vadd.f32 %v325_v26, %v309_v0  ;;  %v311_v28 = vmul.f32 %v127_v1, %v127_v1 }
  0xd2   :  { %380 = vst [vmem:[#allocation2 + $0x18] sm:$0xff] %v364_v42  ;;  %383 = vst [vmem:[#allocation2 + $0x30] sm:$0xff] %v367_v17  ;;  %v350_v30 = vmul.f32 %v286_v48, %v286_v48  ;;  %v353_v36 = vmul.f32 %v289_v18, %v289_v18  ;;  %v326_v16 = vmul.f32 %v210_v6, %v210_v6 }
  0xd3   :  { %v243_v38 = vpop.permute.xlu1 %242  ;;  %v255_v47 = vpop.permute.xlu0 %254  ;;  %v340_v54 = vadd.f32 %v324_v5, %v308_v34  ;;  %v343_v42 = vadd.f32 %v327_v23, %v311_v28  ;;  %v212_v17 = vsub.f32 %v559_v60, %v547_v52  ;;  %v128_v20 = vsub.f32 %v532_v33, %v553_v56 }
  0xd4   :  { %v366_v45 = vadd.f32 %v350_v30, %v334_v19  ;;  %v369_v50 = vadd.f32 %v353_v36, %v337_v35  ;;  %v288_v41 = vsub.f32 %v243_v38, %v563_v63  ;;  %v291_v53 = vsub.f32 %v255_v47, %v563_v63 }
  0xd5   :  { %v342_v25 = vadd.f32 %v326_v16, %v310_v31  ;;  %v328_v30 = vmul.f32 %v212_v17, %v212_v17  ;;  %v312_v52 = vmul.f32 %v128_v20, %v128_v20 }
  0xd6   :  { %382 = vst [vmem:[#allocation2 + $0x28] sm:$0xff] %v366_v45  ;;  %385 = vst [vmem:[#allocation2 + $0x40] sm:$0xff] %v369_v50  ;;  %v352_v32 = vmul.f32 %v288_v41, %v288_v41  ;;  %v355_v58 = vmul.f32 %v291_v53, %v291_v53 }
  0xd7   :  { %v251_v2 = vpop.permute.xlu1 %250  ;;  %v263_v3 = vpop.permute.xlu0 %262  ;;  %v344_v43 = vadd.f32 %v328_v30, %v312_v52 }
  0xd8   :  { %v368_v4 = vadd.f32 %v352_v32, %v336_v51  ;;  %v371_v49 = vadd.f32 %v355_v58, %v339_v57  ;;  %v290_v40 = vsub.f32 %v251_v2, %v563_v63  ;;  %v293_v59 = vsub.f32 %v263_v3, %v563_v63 }
  0xda   :  { %384 = vst [vmem:[#allocation2 + $0x38] sm:$0xff] %v368_v4  ;;  %387 = vst [vmem:[#allocation2 + $0x50] sm:$0xff] %v371_v49  ;;  %v354_v29 = vmul.f32 %v290_v40, %v290_v40  ;;  %v357_v8 = vmul.f32 %v293_v59, %v293_v59 }
  0xdb   :  { %v259_v10 = vpop.permute.xlu1 %258  ;;  %v271_v11 = vpop.permute.xlu0 %270 }
  0xdc   :  { %v370_v12 = vadd.f32 %v354_v29, %v338_v44  ;;  %v373_v13 = vadd.f32 %v357_v8, %v341_v7  ;;  %v292_v14 = vsub.f32 %v259_v10, %v563_v63  ;;  %v295_v15 = vsub.f32 %v271_v11, %v563_v63 }
  0xde   :  { %386 = vst [vmem:[#allocation2 + $0x48] sm:$0xff] %v370_v12  ;;  %389 = vst [vmem:[#allocation2 + $0x60] sm:$0xff] %v373_v13  ;;  %v356_v48 = vmul.f32 %v292_v14, %v292_v14  ;;  %v359_v18 = vmul.f32 %v295_v15, %v295_v15 }
  0xdf   :  { %v267_v19 = vpop.permute.xlu1 %266 }
  0xe0   :  { %v372_v22 = vadd.f32 %v356_v48, %v340_v54  ;;  %v375_v24 = vadd.f32 %v359_v18, %v343_v42  ;;  %v294_v35 = vsub.f32 %v267_v19, %v563_v63 }
  0xe2   :  { %388 = vst [vmem:[#allocation2 + $0x58] sm:$0xff] %v372_v22  ;;  %391 = vst [vmem:[#allocation2 + $0x70] sm:$0xff] %v375_v24  ;;  %v358_v36 = vmul.f32 %v294_v35, %v294_v35 }
  0xe3   :  { %v275_v37 = vpop.permute.xlu1 %274 }
  0xe4   :  { %v374_v60 = vadd.f32 %v358_v36, %v342_v25  ;;  %v296_v39 = vsub.f32 %v275_v37, %v563_v63 }
  0xe6   :  { %390 = vst [vmem:[#allocation2 + $0x68] sm:$0xff] %v374_v60  ;;  %v360_v46 = vmul.f32 %v296_v39, %v296_v39 }
  0xe8   :  { %v376_v33 = vadd.f32 %v360_v46, %v344_v43 }
  0xea   :  { %392 = vst [vmem:[#allocation2 + $0x78] sm:$0xff] %v376_v33 }
  0xeb   :  { %432 = shalt.err (!%p429_p4)
}
  0xec   :  { %s433_s18 = scalar_lea.hbm %s642_s2, 2048 }
  0xed   :  { %p434_p5 = scmp.ne.s32.totalorder %s642_s2, %s433_s18  ;;  %p437_p6 = scmp.lt.u32.totalorder %s433_s18, %s642_s2 }
  0xef   :  { %p439_p7 = pnand %p437_p6, %p434_p5 }
  0xf1   :  { %442 = shalt.err (!%p439_p7)
}
  0xf2   :  { %s449_s23 = smov 128   ;;  %s450_s24 = smov 8  }
  0xf3   :  { %404 = dma.vmem_to_hbm [thread:$0]  %s399_s14, 2048, %s642_s2, [#allocation3], %s449_s23, %s449_s23, %s450_s24  }
  0xf4   :  { %443 = dma.done.wait [#allocation3], 2048  }
  0xf5   :  { %444 = vsyncadd [#allocation3], 4294965248 }
  0xf6   :  { %408 = vsyncpa [#allocation3], 1 }

</bundles_post_ra>
